<compile_context>
chip_gen: v7x
topology: tpu7x:2x2x1
jax: 0.10.0
libtpu: 0.0.40
codegen_flags: <defaults>
</compile_context>

<pallas_src>
import functools

import jax
import jax.numpy as jnp
from jax.experimental import pallas as pl
from jax.experimental.pallas import tpu as pltpu


def _transition_kernel(x_ref, scale_ref, shift_ref, w_ref, o_ref):
    # x_ref:     (1, TH, W, Cin)      one row-tile of one image (NHWC, channels on lanes)
    # scale_ref: (1, Cin)             folded BN scale = gamma / sqrt(var + eps)      (f32)
    # shift_ref: (1, Cin)             folded BN shift = beta - mean * scale          (f32)
    # w_ref:     (Cin, Cout)          1x1 conv weight * 0.25 (pool norm folded in)
    # o_ref:     (1, TH//2, W//2, Cout)
    x = x_ref[0].astype(jnp.float32)                 # upcast if staged in bf16
    scale = scale_ref[0]                             # (Cin,)
    shift = shift_ref[0]                             # (Cin,)

    th, w, cin = x.shape
    th2, w2 = th // 2, w // 2
    cout = w_ref.shape[1]

    # Folded BatchNorm + ReLU -- elementwise on the VPU, f32.
    y = jnp.maximum(x * scale + shift, 0.0)          # (TH, W, Cin)

    # 2x2 average pool BEFORE the 1x1 conv (both linear -> they commute).  The 1/4
    # normalization is folded into w_ref by the wrapper, so only sums are done here.
    # H pool: splitting the leading (non-minor) dim is layout-free.
    y = y.reshape(th2, 2, w, cin).sum(axis=1)        # (TH//2, W, Cin)
    # W pool: sublane split + reduce (cheap relative to the mem-bound DMA; XLU has slack).
    p = y.reshape(th2, w2, 2, cin).sum(axis=2)       # (TH//2, W//2, Cin)

    # 1x1 convolution == matmul over channels (MXU), f32 accumulation.
    p = p.astype(w_ref.dtype)
    if w2 % 8 == 0:
        z = jnp.dot(p.reshape(th2 * w2, cin), w_ref[...],
                    preferred_element_type=jnp.float32).reshape(th2, w2, cout)
    else:
        # Avoid flattening a non-8-aligned sublane dim (would re-tile / copy the block).
        z = jax.lax.dot_general(p, w_ref[...],
                                dimension_numbers=(((2,), (0,)), ((), ())),
                                preferred_element_type=jnp.float32)

    o_ref[0] = z.astype(o_ref.dtype)


def _vmem_budgets():
    """Return (per-input-buffer byte budget, vmem_limit_bytes), generation-aware."""
    try:
        cap = int(pltpu.get_tpu_info().vmem_capacity_bytes)
    except Exception:
        cap = 128 * 1024 * 1024
    if cap <= 80 * 1024 * 1024:
        # v7x-class TensorCore: 64 MiB physical VMEM -> keep the double-buffered input,
        # output and resident weight comfortably under a ~48 MiB scoped limit.
        return 8 * 1024 * 1024, 48 * 1024 * 1024
    # v5e / v6e: 128 MiB physical VMEM -> bigger tiles / DMAs are free.
    return 12 * 1024 * 1024, 96 * 1024 * 1024


def _pick_tile_h(H, W, Cin, n_batch, itemsize, budget_bytes, min_steps=4):
    """Largest even divisor of H whose input slab fits the per-buffer budget, while
    keeping at least `min_steps` total grid iterations (>= 2 per TensorCore on v7x)."""
    divisors = [th for th in range(2, H + 1, 2) if H % th == 0]
    fitting = [th for th in divisors if th * W * Cin * itemsize <= budget_bytes]
    if not fitting:
        return 2
    th = max(fitting)
    if n_batch * (H // th) < min_steps:
        better = [t for t in fitting if n_batch * (H // t) >= min_steps]
        th = max(better) if better else min(fitting)
    return th


def transition_layer(x_nchw, gamma, beta, conv_w, eps=1e-5,
                     mxu_dtype=jnp.bfloat16, channels_last_out=False):
    """Forward of TransitionLayer.  x_nchw: (N, Cin, H, W) -> (N, Cout, H//2, W//2)."""
    N, Cin, H, W = x_nchw.shape
    Cout = conv_w.shape[0]
    # TODO(synk): odd H/W (PyTorch AvgPool2d floors the output size) is not handled.
    assert H % 2 == 0 and W % 2 == 0, "TransitionLayer kernel assumes even H and W"

    use_bf16 = jnp.dtype(mxu_dtype) == jnp.dtype(jnp.bfloat16)
    stage_dtype = jnp.bfloat16 if use_bf16 else jnp.float32

    # BatchNorm batch statistics (training-mode forward, biased variance), computed as a
    # single fused per-channel sum/sumsq pass over x_nchw so XLA can fuse it with the
    # transpose read below; the NHWC copy is written once and read once (by the kernel).
    xf = x_nchw.astype(jnp.float32)
    n_red = N * H * W
    s1 = jnp.sum(xf, axis=(0, 2, 3))                              # (Cin,)
    s2 = jnp.sum(xf * xf, axis=(0, 2, 3))                         # (Cin,)
    mean = s1 / n_red
    var = s2 / n_red - mean * mean                                # biased variance
    scale = gamma.astype(jnp.float32) * jax.lax.rsqrt(var + eps)
    shift = beta.astype(jnp.float32) - mean * scale

    # NCHW -> NHWC staging copy (channels on lanes).  bf16 staging halves the dominant
    # HBM read and the input VMEM slab; scale/shift stay f32 and BN/ReLU/pool run in f32
    # inside the kernel.
    x = jnp.transpose(x_nchw, (0, 2, 3, 1)).astype(stage_dtype)   # (N, H, W, Cin)

    # 1x1 conv weight in matmul form; fold the 2x2 average-pool 1/4 into the weight.
    w = (conv_w.reshape(Cout, Cin).T.astype(jnp.float32) * 0.25).astype(mxu_dtype)

    budget_bytes, vmem_limit = _vmem_budgets()
    TH = _pick_tile_h(H, W, Cin, N, jnp.dtype(stage_dtype).itemsize, budget_bytes)
    grid = (N, H // TH)
    # TODO(synk): for tiny per-image slabs (late transition layers) also tile over N or
    # raise pipeline depth (pl.Buffered(3)) on x, and give the constant scale/shift/w
    # specs pl.Buffered(1) so they don't get a second VMEM buffer.

    out_nhwc = pl.pallas_call(
        _transition_kernel,
        out_shape=jax.ShapeDtypeStruct((N, H // 2, W // 2, Cout), jnp.float32),
        grid=grid,
        in_specs=[
            pl.BlockSpec((1, TH, W, Cin), lambda n, h: (n, h, 0, 0)),
            pl.BlockSpec((1, Cin), lambda n, h: (0, 0)),
            pl.BlockSpec((1, Cin), lambda n, h: (0, 0)),
            pl.BlockSpec((Cin, Cout), lambda n, h: (0, 0)),
        ],
        out_specs=pl.BlockSpec((1, TH // 2, W // 2, Cout), lambda n, h: (n, h, 0, 0)),
        compiler_params=pltpu.CompilerParams(
            dimension_semantics=("parallel", "parallel"),
            vmem_limit_bytes=vmem_limit,
        ),
    )(x, scale.reshape(1, Cin), shift.reshape(1, Cin), w)

    if channels_last_out:
        # Channels-last consumers skip the extra output read+write of the transpose.
        return out_nhwc
    # Back to the PyTorch NCHW convention.  Kept out of the kernel on purpose: an NCHW
    # out block would put W/2 on lanes and degrade to masked stores for typical W.
    return jnp.transpose(out_nhwc, (0, 3, 1, 2))


def _reference(x_nchw, gamma, beta, conv_w, eps=1e-5):
    """Pure-JAX reference matching the PyTorch forward pass (conv then pool)."""
    N, Cin, H, W = x_nchw.shape
    Cout = conv_w.shape[0]
    mean = jnp.mean(x_nchw, axis=(0, 2, 3)).reshape(1, Cin, 1, 1)
    var = jnp.var(x_nchw, axis=(0, 2, 3)).reshape(1, Cin, 1, 1)
    y = (x_nchw - mean) / jnp.sqrt(var + eps)
    y = y * gamma.reshape(1, Cin, 1, 1) + beta.reshape(1, Cin, 1, 1)
    y = jnp.maximum(y, 0.0)
    z = jnp.einsum("nchw,oc->nohw", y, conv_w.reshape(Cout, Cin))
    z = z.reshape(N, Cout, H // 2, 2, W // 2, 2).mean(axis=(3, 5))
    return z


if __name__ == "__main__":
    key = jax.random.PRNGKey(0)
    k_x, k_g, k_b, k_w = jax.random.split(key, 4)

    N, Cin, H, W = 2, 4, 16, 16
    Cout = 2  # DenseNet transition typically halves the channel count

    x = jax.random.normal(k_x, (N, Cin, H, W), dtype=jnp.float32)
    gamma = 1.0 + 0.1 * jax.random.normal(k_g, (Cin,), dtype=jnp.float32)
    beta = 0.1 * jax.random.normal(k_b, (Cin,), dtype=jnp.float32)
    conv_w = 0.1 * jax.random.normal(k_w, (Cout, Cin, 1, 1), dtype=jnp.float32)

    ref = _reference(x, gamma, beta, conv_w)

    # Exact-parity path: f32 staging + f32 MXU feed.
    fwd_f32 = jax.jit(functools.partial(transition_layer, mxu_dtype=jnp.float32))
    out = jax.block_until_ready(fwd_f32(x, gamma, beta, conv_w))
    assert out.shape == (N, Cout, H // 2, W // 2), out.shape
    assert jnp.allclose(out, ref, rtol=2e-5, atol=2e-5), \
        float(jnp.max(jnp.abs(out - ref)))

    # Default fast path: bf16 staging + bf16 MXU feed, f32 accumulation.
    fwd = jax.jit(transition_layer)
    out_bf16 = jax.block_until_ready(fwd(x, gamma, beta, conv_w))
    assert out_bf16.shape == (N, Cout, H // 2, W // 2), out_bf16.shape
    assert jnp.allclose(out_bf16, ref, rtol=2e-2, atol=2e-2), \
        float(jnp.max(jnp.abs(out_bf16 - ref)))

    print("KERNEL_OK")
</pallas_src>

<mosaic_0001>
module attributes {stable_mosaic.version = 11 : i64} {
  func.func @_transition_kernel(%arg0: i32, %arg1: i32, %arg2: memref<1x8x16x4xf32, #tpu.memory_space<vmem>>, %arg3: memref<1x4xf32, #tpu.memory_space<vmem>>, %arg4: memref<1x4xf32, #tpu.memory_space<vmem>>, %arg5: memref<4x2xf32, #tpu.memory_space<vmem>>, %arg6: memref<1x4x8x2xf32, #tpu.memory_space<vmem>>) attributes {dimension_semantics = [#tpu.dimension_semantics<parallel>, #tpu.dimension_semantics<parallel>], iteration_bounds = array<i64: 2, 2>, scalar_prefetch = 0 : i64, scratch_operands = 0 : i64, tpu.core_type = #tpu.core_type<tc>, window_params = [{transform_indices = @transform_0, window_bounds = array<i64: 1, 8, 16, 4>}, {pipeline_mode = #tpu.pipeline_mode<synchronous>, transform_indices = @transform_1, window_bounds = array<i64: 1, 4>}, {pipeline_mode = #tpu.pipeline_mode<synchronous>, transform_indices = @transform_2, window_bounds = array<i64: 1, 4>}, {pipeline_mode = #tpu.pipeline_mode<synchronous>, transform_indices = @transform_3, window_bounds = array<i64: 4, 2>}, {transform_indices = @transform_4, window_bounds = array<i64: 1, 4, 8, 2>}]} {
    %c0 = arith.constant 0 : index
    %c0_0 = arith.constant 0 : index
    %c0_1 = arith.constant 0 : index
    %c0_2 = arith.constant 0 : index
    %0 = vector.load %arg2[%c0, %c0_0, %c0_1, %c0_2] : memref<1x8x16x4xf32, #tpu.memory_space<vmem>>, vector<1x8x16x4xf32>
    %1 = vector.shape_cast %0 : vector<1x8x16x4xf32> to vector<8x16x4xf32>
    %c0_3 = arith.constant 0 : index
    %c0_4 = arith.constant 0 : index
    %2 = vector.load %arg3[%c0_3, %c0_4] : memref<1x4xf32, #tpu.memory_space<vmem>>, vector<1x4xf32>
    %3 = vector.shape_cast %2 : vector<1x4xf32> to vector<4xf32>
    %c0_5 = arith.constant 0 : index
    %c0_6 = arith.constant 0 : index
    %4 = vector.load %arg4[%c0_5, %c0_6] : memref<1x4xf32, #tpu.memory_space<vmem>>, vector<1x4xf32>
    %5 = vector.shape_cast %4 : vector<1x4xf32> to vector<4xf32>
    %6 = vector.shape_cast %3 : vector<4xf32> to vector<1x1x4xf32>
    %7 = vector.broadcast %6 : vector<1x1x4xf32> to vector<8x16x4xf32>
    %8 = arith.mulf %1, %7 : vector<8x16x4xf32>
    %9 = vector.shape_cast %5 : vector<4xf32> to vector<1x1x4xf32>
    %10 = vector.broadcast %9 : vector<1x1x4xf32> to vector<8x16x4xf32>
    %11 = arith.addf %8, %10 : vector<8x16x4xf32>
    %cst = arith.constant 0.000000e+00 : f32
    %12 = vector.broadcast %cst : f32 to vector<8x16x4xf32>
    %13 = arith.maximumf %11, %12 : vector<8x16x4xf32>
    %14 = vector.shape_cast %13 : vector<8x16x4xf32> to vector<4x2x16x4xf32>
    %cst_7 = arith.constant dense<0.000000e+00> : vector<4x16x4xf32>
    %15 = vector.multi_reduction <add>, %14, %cst_7 [1] : vector<4x2x16x4xf32> to vector<4x16x4xf32>
    %16 = vector.shape_cast %15 : vector<4x16x4xf32> to vector<4x8x2x4xf32>
    %cst_8 = arith.constant dense<0.000000e+00> : vector<4x8x4xf32>
    %17 = vector.multi_reduction <add>, %16, %cst_8 [2] : vector<4x8x2x4xf32> to vector<4x8x4xf32>
    %18 = vector.shape_cast %17 : vector<4x8x4xf32> to vector<32x4xf32>
    %c0_9 = arith.constant 0 : index
    %c0_10 = arith.constant 0 : index
    %19 = vector.load %arg5[%c0_9, %c0_10] : memref<4x2xf32, #tpu.memory_space<vmem>>, vector<4x2xf32>
    %cst_11 = arith.constant dense<0.000000e+00> : vector<32x2xf32>
    %20 = tpu.matmul %18, %19, %cst_11 {dimension_numbers = #tpu.dot_dimension_numbers<[1], [0], [0], [1], [0, 0, 1, 1], [], []>} : vector<32x4xf32>, vector<4x2xf32>, vector<32x2xf32> -> vector<32x2xf32>
    %21 = vector.shape_cast %20 : vector<32x2xf32> to vector<4x8x2xf32>
    %c0_12 = arith.constant 0 : index
    %c0_13 = arith.constant 0 : index
    %c0_14 = arith.constant 0 : index
    %c0_15 = arith.constant 0 : index
    %22 = vector.load %arg6[%c0_12, %c0_13, %c0_14, %c0_15] : memref<1x4x8x2xf32, #tpu.memory_space<vmem>>, vector<1x4x8x2xf32>
    %23 = vector.shape_cast %22 : vector<1x4x8x2xf32> to vector<4x8x2xf32>
    %24 = vector.shape_cast %21 : vector<4x8x2xf32> to vector<1x4x8x2xf32>
    tpu.vector_store %arg6[%c0_12, %c0_13, %c0_14, %c0_15], %24 {strides = array<i32>} : memref<1x4x8x2xf32, #tpu.memory_space<vmem>>, vector<1x4x8x2xf32>,
    return
  }
  func.func @transform_0(%arg0: i32, %arg1: i32) -> (i32, i32, i32, i32) {
    %c0_i32 = arith.constant 0 : i32
    %c0_i32_0 = arith.constant 0 : i32
    %c0_i32_1 = arith.constant 0 : i32
    return %arg0, %arg1, %c0_i32, %c0_i32_0 : i32, i32, i32, i32
  }
  func.func @transform_1(%arg0: i32, %arg1: i32) -> (i32, i32) {
    %c0_i32 = arith.constant 0 : i32
    %c0_i32_0 = arith.constant 0 : i32
    %c0_i32_1 = arith.constant 0 : i32
    return %c0_i32, %c0_i32_0 : i32, i32
  }
  func.func @transform_2(%arg0: i32, %arg1: i32) -> (i32, i32) {
    %c0_i32 = arith.constant 0 : i32
    %c0_i32_0 = arith.constant 0 : i32
    %c0_i32_1 = arith.constant 0 : i32
    return %c0_i32, %c0_i32_0 : i32, i32
  }
  func.func @transform_3(%arg0: i32, %arg1: i32) -> (i32, i32) {
    %c0_i32 = arith.constant 0 : i32
    %c0_i32_0 = arith.constant 0 : i32
    %c0_i32_1 = arith.constant 0 : i32
    return %c0_i32, %c0_i32_0 : i32, i32
  }
  func.func @transform_4(%arg0: i32, %arg1: i32) -> (i32, i32, i32, i32) {
    %c0_i32 = arith.constant 0 : i32
    %c0_i32_0 = arith.constant 0 : i32
    %c0_i32_1 = arith.constant 0 : i32
    return %arg0, %arg1, %c0_i32, %c0_i32_0 : i32, i32, i32, i32
  }
}

</mosaic_0001>

<bundles_post_ra>
// kernel: transition_layer.1
= control target key start
LH: loop header
LB: loop body
LE: loop exit
PB: predicated region body
PF: predicated region fallthrough
CT: control target
= control target key end

     0   :  { %s1994_s0 = inlined_call_operand.hbm [shape: f32[2,16,16,4], index: 0, kind: input, shape index: {}]   ;;  %s1995_s1 = inlined_call_operand.hbm [shape: f32[1,4], index: 1, kind: input, shape index: {}]   ;;  %s1996_s2 = inlined_call_operand.hbm [shape: f32[1,4], index: 2, kind: input, shape index: {}]   ;;  %s1997_s3 = inlined_call_operand.hbm [shape: f32[4,2], index: 3, kind: input, shape index: {}]   ;;  %s1998_s4 = inlined_call_operand.hbm [shape: f32[2,8,8,2], index: 4, kind: output, shape index: {}]  }
   0x1   :  { %2006 = sst [smem:[#allocation18_spill]] %s1995_s1 }
   0x2   :  { %2007 = sst [smem:[#allocation19_spill]] %s1996_s2 }
   0x3   :  { %2008 = sst [smem:[#allocation20_spill]] %s1997_s3 }
   0x4   :  { %9 = vsyncpa [#allocation3], 0 }
   0x5   :  { %11 = vsyncpa [#allocation3 + $0x1], 0 }
   0x6   :  { %12 = vsyncpa [#allocation6], 0 }
   0x7   :  { %13 = vsyncpa [#allocation9], 0 }
   0x8   :  { %14 = vsyncpa [#allocation4], 0 }
   0x9   :  { %16 = vsyncpa [#allocation4 + $0x1], 0  ;;  %s1502_s15 = smov 0   ;;  %s1504_s16 = smov 0  }
   0xa   :  { %s1506_s17 = smov 0   ;;  %s1508_s18 = smov 0  }
   0xb   :  { %s1510_s19 = smov 0   ;;  %s1512_s20 = smov 0  }
   0xc   :  { %s1514_s21 = smov 0   ;;  %s1516_s22 = smov 0  }
   0xd LB: > { %s1084_s23 = sadd.s32 4294967295, %s1465_s22   ;;  %s1085_s24 = sadd.s32 4294967294, %s1465_s22   ;;  %s1465_s22 = sphi %s1516_s22, %s22_s22   ;;  %s1461_s21 = sphi %s1514_s21, %s2039_s21   ;;  %s1457_s20 = sphi %s1512_s20, %s2038_s20   ;;  %s1453_s19 = sphi %s1510_s19, %s2037_s19   ;;  %s1449_s18 = sphi %s1508_s18, %s2036_s18   ;;  %s1445_s17 = sphi %s1506_s17, %s2035_s17   ;;  %s1441_s16 = sphi %s1504_s16, %s2034_s16   ;;  %s1437_s15 = sphi %s1502_s15, %s2033_s15  }
   0xe   : > { %p56_p0 = scmp.ne.s32.totalorder %s1441_s16, %s1437_s15  ;;  %p1546_p1 = scmp.eq.s32.totalorder %s1084_s23, 0 }
   0xf   : > { %p1550_p2 = scmp.eq.s32.totalorder %s1084_s23, 3  ;;  %p151_p3 = scmp.eq.s32.totalorder %s1085_s24, 3 }
  0x10   : > { %s2009_s25 = scalar_select %p1546_p1, 1, 0 }
  0x11   : > { %s2010_s26 = scalar_select %p1550_p2, 1, 0 }
  0x12   : > { %p1556_p4 = por %p1546_p1, %p56_p0  ;;  %p1086_p5 = scmp.ge.s32.totalorder %s1465_s22, 1 }
  0x13   : > { %p1561_p6 = por %p151_p3, %p56_p0  ;;  %p158_p7 = scmp.lt.s32.totalorder %s1465_s22, 5 }
  0x14   : > { %s2011_s27 = scalar_select %p1556_p4, 1, 0 }
  0x15   : > { %s2012_s28 = scalar_select %p1561_p6, 1, 0 }
  0x16   : > { %p1566_p8 = pnand %p1086_p5, %p158_p7  ;;  %s1467_s30 = smov [#allocation5]  }
  0x17   : > { %2013 = sst [smem:[#allocation15_spill]] %s2012_s28  ;;  %s171_s5 = sshll.u32 %s1467_s30, 4  ;;  %s172_s5 = int_to_ptr.vmem [resolvable:$true] %s171_s5 }
  0x18   : > { %s2014_s29 = scalar_select %p1566_p8, 1, 0 }
  0x19   : > { %p1147_p9 = pneg %p1566_p8  ;;  %s1468_s6 = smov [#allocation7]  }
  0x1a   : > { %s182_s7 = sshll.u32 %s1468_s6, 4  ;;  %s1469_s9 = smov [#allocation8]   ;;  %s1578_s7 = int_to_ptr.vmem [resolvable:$true] %s182_s7 }
  0x1b   : > { %p1574_p10 = pnand %p1147_p9, %p1546_p1  ;;  %s193_s10 = sshll.u32 %s1469_s9, 4  ;;  %s1580_s10 = int_to_ptr.vmem [resolvable:$true] %s193_s10 }
  0x1c   : > { %s2016_s1 = sld [smem:[#allocation18_spill]] }
  0x1d   : > { %p1590_p12 = pneg %p1574_p10 }
  0x22   : > { %s1245_s13 = scalar_lea.hbm %s2016_s1, 16 }
  0x23   : > { %p1246_p11 = scmp.ne.s32.totalorder %s2016_s1, %s1245_s13  ;;  %p1252_p3 = scmp.lt.u32.totalorder %s1245_s13, %s2016_s1 }
  0x25   : > { %p1248_p13 = pnand %p1590_p12, %p1246_p11 }
  0x27   : > { %p1249_p0 = pneg %p1248_p13 }
  0x29   : > { %p1254_p5 = pnand %p1252_p3, %p1249_p0 }
  0x2b   : > { %1257 = shalt.err (!%p1254_p5)
}
  0x2c   : > { %s1258_s9 = scalar_lea.vmem %s172_s5, 16  ;;  %s1265_s11 = scalar_lea.vmem %s172_s5, 32 }
  0x2d   : > { %p1259_p7 = scmp.ne.s32.totalorder %s172_s5, %s1258_s9  ;;  %p1266_p1 = scmp.lt.s32.totalorder %s172_s5, %s172_s5 }
  0x2e   : > { %p1267_p4 = scmp.lt.s32.totalorder %s1265_s11, %s1258_s9 }
  0x2f   : > { %p1261_p9 = pnand %p1259_p7, %p1590_p12 }
  0x30   : > { %p1268_p8 = por %p1267_p4, %p1266_p1 }
  0x31   : > { %p1262_p6 = pneg %p1261_p9 }
  0x33   : > { %p1269_p2 = pnand %p1268_p8, %p1262_p6 }
  0x35   : > { %1272 = shalt.err (!%p1269_p2)
}
  0x36   : > { %1150 = dma.hbm_to_vmem [thread:$0]  (!%p1574_p10), %s2016_s1, 16, %s172_s5, [#allocation6]  }
  0x37   : > { %s2018_s2 = sld [smem:[#allocation19_spill]] }
  0x3d   : > { %s1273_s30 = scalar_lea.hbm %s2018_s2, 16 }
  0x3e   : > { %p1274_p11 = scmp.ne.s32.totalorder %s2018_s2, %s1273_s30  ;;  %p1280_p2 = scmp.lt.u32.totalorder %s1273_s30, %s2018_s2 }
  0x40   : > { %p1276_p13 = pnand %p1274_p11, %p1590_p12 }
  0x42   : > { %p1277_p1 = pneg %p1276_p13 }
  0x44   : > { %p1282_p4 = pnand %p1280_p2, %p1277_p1 }
  0x46   : > { %1285 = shalt.err (!%p1282_p4)
}
  0x47   : > { %s1286_s5 = scalar_lea.vmem %s1578_s7, 16  ;;  %s1293_s28 = scalar_lea.vmem %s1578_s7, 32 }
  0x48   : > { %p1287_p6 = scmp.ne.s32.totalorder %s1578_s7, %s1286_s5  ;;  %p1294_p3 = scmp.lt.s32.totalorder %s1578_s7, %s1578_s7 }
  0x49   : > { %p1295_p5 = scmp.lt.s32.totalorder %s1293_s28, %s1286_s5 }
  0x4a   : > { %p1289_p8 = pnand %p1287_p6, %p1590_p12 }
  0x4b   : > { %p1296_p7 = por %p1295_p5, %p1294_p3 }
  0x4c   : > { %p1290_p0 = pneg %p1289_p8 }
  0x4e   : > { %p1297_p9 = pnand %p1296_p7, %p1290_p0 }
  0x50   : > { %1300 = shalt.err (!%p1297_p9)
}
  0x51   : > { %1153 = dma.hbm_to_vmem [thread:$0]  (!%p1574_p10), %s2018_s2, 16, %s1578_s7, [#allocation6]  }
  0x52   : > { %s2019_s3 = sld [smem:[#allocation20_spill]] }
  0x58   : > { %s1301_s30 = scalar_lea.hbm %s2019_s3, 64 }
  0x59   : > { %p1302_p11 = scmp.ne.s32.totalorder %s2019_s3, %s1301_s30  ;;  %p1308_p2 = scmp.lt.u32.totalorder %s1301_s30, %s2019_s3 }
  0x5b   : > { %p1304_p13 = pnand %p1302_p11, %p1590_p12 }
  0x5d   : > { %p1305_p1 = pneg %p1304_p13 }
  0x5f   : > { %p1310_p4 = pnand %p1308_p2, %p1305_p1 }
  0x61   : > { %1313 = shalt.err (!%p1310_p4)
}
  0x62   : > { %s1314_s7 = scalar_lea.vmem %s1580_s10, 64  ;;  %p1322_p3 = scmp.lt.s32.totalorder %s1580_s10, %s1580_s10 }
  0x63   : > { %p1315_p6 = scmp.ne.s32.totalorder %s1580_s10, %s1314_s7  ;;  %p1323_p5 = scmp.lt.s32.totalorder %s1314_s7, %s1314_s7 }
  0x65   : > { %p1317_p8 = pnand %p1315_p6, %p1590_p12  ;;  %p1324_p7 = por %p1323_p5, %p1322_p3 }
  0x67   : > { %p1318_p0 = pneg %p1317_p8 }
  0x69   : > { %p1325_p9 = pnand %p1324_p7, %p1318_p0 }
  0x6b   : > { %1328 = shalt.err (!%p1325_p9)
}
  0x6c   : > { %1156 = dma.hbm_to_vmem [thread:$0]  (!%p1574_p10), %s2019_s3, 64, %s1580_s10, [#allocation9]  }
  0x6d   : > { %s31_s24 = sadd.s32 1, %s1457_s20  ;;  %s34_s8 = sadd.s32 1, %s1461_s21 }
  0x6e   : > { %p32_p12 = scmp.ge.s32.totalorder %s31_s24, 2  ;;  %s43_s14 = sadd.s32 1, %s1445_s17 }
  0x6f   : > { %p50_p11 = scmp.ne.s32.totalorder %s1445_s17, %s1441_s16  ;;  %p51_p13 = scmp.eq.s32.totalorder %s1465_s22, 0 }
  0x70   : > { %s2041_s24 = smov (%p32_p12, %s31_s24), 0  ;;  %s2043_s8 = smov (!%p32_p12, %s34_s8), %s1461_s21 }
  0x71   : > { %2020 = sst [smem:[#allocation16_spill]] %s2041_s24  ;;  %s39_s13 = ssub.s32 %s1457_s20, %s2041_s24 }
  0x72   : > { %p36_p1 = scmp.ge.s32.totalorder %s2043_s8, 2  ;;  %p2021_p2 = scmp.ne.s32.totalorder %s2010_s26, 0 }
  0x73   : > { %p1670_p10 = por %p51_p13, %p50_p11  ;;  %p1168_p6 = scmp.lt.s32.totalorder %s1465_s22, 4 }
  0x74   : > { %p1666_p4 = por %p2021_p2, %p50_p11  ;;  %s2045_s8 = smov (%p36_p1, %s2043_s8), 0 }
  0x75   : > { %2024 = sst [smem:[#allocation17_spill]] %s2045_s8  ;;  %s204_s30 = sand.u32 1, %s1445_s17  }
  0x76   : > { %s1115_s6 = sshll.u32 %s1457_s20, 4  ;;  %s38_s9 = ssub.s32 %s1461_s21, %s2045_s8 }
  0x77   : > { %s40_s11 = sor.u32 %s39_s13, %s38_s9  ;;  %s1091_s5 = sshll.u32 %s204_s30, 7 }
  0x78   : > { %p41_p8 = scmp.eq.s32.totalorder %s40_s11, 0  ;;  %s1094_s26 = sshll.u32 %s1461_s21, 5 }
  0x79   : > { %s208_s7 = scalar_lea.vmem [#allocation2], %s1091_s5  ;;  %s215_s1 = sadd.s32 %s1115_s6, %s1094_s26 }
  0x7a   : > { %s218_s28 = sshll.u32 %s208_s7, 4  ;;  %s1095_s2 = sshll.u32 %s215_s1, 7  ;;  %s1685_s28 = int_to_ptr.vmem [resolvable:$true] %s218_s28 }
  0x7b   : > { %s1683_s12 = scalar_select %p41_p8, %s1445_s17, %s43_s14  }
  0x7c   : > { %p1691_p0 = pnand %p1168_p6, %p1670_p10  ;;  %s1698_s13 = scalar_lea.hbm %s1994_s0, %s1095_s2 }
  0x7d   : > { %s1700_s14 = scalar_lea.sflag [#allocation3], %s204_s30  ;;  %s1329_s1 = scalar_lea.hbm %s1698_s13, 2048 }
  0x7e   : > { %p1330_p3 = scmp.ne.s32.totalorder %s1698_s13, %s1329_s1  ;;  %p1331_p5 = pneg %p1691_p0 }
  0x7f   : > { %s1334_s8 = scalar_lea.hbm %s1994_s0, 8192  ;;  %p1335_p12 = scmp.lt.u32.totalorder %s1698_s13, %s1994_s0 }
  0x80   : > { %p1332_p7 = pnand %p1331_p5, %p1330_p3  ;;  %p1336_p11 = scmp.lt.u32.totalorder %s1334_s8, %s1329_s1 }
  0x81   : > { %p1338_p1 = scmp.lt.u32.totalorder %s1329_s1, %s1698_s13 }
  0x82   : > { %p1333_p9 = pneg %p1332_p7  ;;  %p1337_p13 = por %p1336_p11, %p1335_p12 }
  0x84   : > { %p1339_p2 = por %p1338_p1, %p1337_p13 }
  0x86   : > { %p1340_p10 = pnand %p1339_p2, %p1333_p9 }
  0x88   : > { %1343 = shalt.err (!%p1340_p10)
}
  0x89   : > { %s1344_s30 = scalar_lea.vmem %s1685_s28, 2048  ;;  %s1470_s9 = smov [#allocation2]  }
  0x8a   : > { %p1345_p6 = scmp.ne.s32.totalorder %s1685_s28, %s1344_s30  ;;  %s1349_s11 = sshll.u32 %s1470_s9, 4  ;;  %s1350_s11 = int_to_ptr.vmem [resolvable:$false] %s1349_s11 }
  0x8b   : > { %s1351_s5 = scalar_lea.vmem %s1350_s11, 4096  ;;  %p1352_p7 = scmp.lt.s32.totalorder %s1685_s28, %s1350_s11 }
  0x8c   : > { %p1347_p8 = pnand %p1345_p6, %p1331_p5  ;;  %p1353_p12 = scmp.lt.s32.totalorder %s1351_s5, %s1344_s30 }
  0x8e   : > { %p1348_p3 = pneg %p1347_p8  ;;  %p1354_p11 = por %p1353_p12, %p1352_p7 }
  0x90   : > { %p1355_p13 = pnand %p1354_p11, %p1348_p3 }
  0x92   : > { %1358 = shalt.err (!%p1355_p13)
}
  0x93   : > { %s1471_s26 = smov 128   ;;  %s1472_s7 = smov 8  }
  0x94   : > { %1160 = dma.hbm_to_vmem [thread:$0]  (!%p1691_p0), %s1698_s13, 2048, %s1685_s28, %s1700_s14, %s1471_s26, %s1471_s26, %s1472_s7  }
  0x95   : > { %p2026_p5 = scmp.ne.s32.totalorder %s2014_s29, 0 }
  0x96   : > { %s1731_s1 = sand.u32 (!%p2026_p5), 1, %s1441_s16   ;;  %p2027_p9 = scmp.ne.s32.totalorder (!%p2026_p5), %s2011_s27, 0 }
  0x97   : > { %230 = sbr.rel (%p2026_p5) target bundleno = 493 (0x1ed), region = 36  ;;  %s1097_s10 = sshll.u32 (!%p2026_p5), %s1731_s1, 7 }
  0x98   : > { %s233_s24 = scalar_lea.sflag (!%p2026_p5), [#allocation3], %s1731_s1  ;;  %s1735_s8 = scalar_lea.vmem (!%p2026_p5), [#allocation2], %s1097_s10 }
  0x9e   : > { %1420 = dma.done.wait (%p2027_p9), %s233_s24, 2048  }
  0x9f   : > { %1422 = vsyncadd (%p2027_p9), %s233_s24, 4294965248  ;;  %p2028_p0 = scmp.ne.s32.totalorder %s2009_s25, 0 }
  0xa1   : > { %1424 = dma.done.wait (%p2028_p0), [#allocation6], 32  }
  0xa2   : > { %1426 = vsyncadd (%p2028_p0), [#allocation6], 4294967264 }
  0xa3   : > { %1428 = dma.done.wait (%p2028_p0), [#allocation9], 64  }
  0xa4   : > { %1430 = vsyncadd (%p2028_p0), [#allocation9], 4294967232  ;;  %v1473_v0 = vmov 1983009808   ;;  %v390_v2 = vlaneseq  ;;  %vm855_vm0 = vcmask 1043456   ;;  %v275_v6 = vld [vmem:[%s1735_s8] sm:$0xff] }
  0xa5   : > { %v388_v1 = vunpack.c.l.s4 %v1473_v0  ;;  %v779_v5 = vld [vmem:[#allocation8] sm:$0xf]  ;;  %v276_v7 = vld [vmem:[%s1735_s8 + $0x8] sm:$0xff]  ;;  %v277_v8 = vld [vmem:[%s1735_s8 + $0x10] sm:$0xff]  ;;  %vm353_vm1 = vcmask 31744   ;;  %vm554_vm2 = vcmask 25600  }
  0xa6   : > { %v391_v4 = vshrl.u32 %v390_v2, 7  ;;  %1121 = vmatprep.subr.msk.mxu0 %vm855_vm0, %v779_v5  ;;  %1129 = vmatprep.subr.msk.mxu1 %vm855_vm0, %v779_v5  ;;  %v278_v9 = vld [vmem:[%s1735_s8 + $0x18] sm:$0xff]  ;;  %v1753_v10 = vld [vmem:[#allocation5] ss:$0 sm:$0xff]  ;;  %v1755_v11 = vld [vmem:[#allocation7] ss:$0 sm:$0xff] }
  0xa7   : > { %v389_v3 = vunpack.c.0.s8 %v388_v1  ;;  %1122 = vmatpush3.msk.msra.mxu0 %vm855_vm0, %v779_v5  ;;  %1130 = vmatpush3.msk.msra.mxu1 %vm855_vm0, %v779_v5  ;;  %v299_v12 = vmul.f32 %v1753_v10, %v275_v6  ;;  %v300_v13 = vmul.f32 %v1753_v10, %v276_v7  ;;  %v301_v14 = vmul.f32 %v1753_v10, %v277_v8  ;;  %v283_v15 = vld [vmem:[%s1735_s8 + $0x40] sm:$0xff]  ;;  %v284_v16 = vld [vmem:[%s1735_s8 + $0x48] sm:$0xff]  ;;  %v285_v19 = vld [vmem:[%s1735_s8 + $0x50] sm:$0xff]  ;;  %s1101_s3 = sshll.u32 %s1731_s1, 5  ;;  %s1110_s27 = sshll.u32 %s1449_s18, 2 }
  0xa8   : > { %v302_v17 = vmul.f32 %v1753_v10, %v278_v9  ;;  %v286_v20 = vld [vmem:[%s1735_s8 + $0x58] sm:$0xff]  ;;  %v307_v21 = vmul.f32 %v1753_v10, %v283_v15  ;;  %v308_v22 = vmul.f32 %v1753_v10, %v284_v16  ;;  %v309_v26 = vmul.f32 %v1753_v10, %v285_v19  ;;  %v279_v39 = vld [vmem:[%s1735_s8 + $0x20] sm:$0xff]  ;;  %v280_v48 = vld [vmem:[%s1735_s8 + $0x28] sm:$0xff]  ;;  %s272_s25 = scalar_lea.vmem [#allocation10], %s1101_s3  ;;  %s1111_s29 = sshll.u32 %s1453_s19, 3 }
  0xa9   : > { %v1763_v18 = vsub.s32 %v389_v3, %v391_v4  ;;  %v321_v23 = vadd.f32 %v1755_v11, %v299_v12  ;;  %v322_v24 = vadd.f32 %v1755_v11, %v300_v13  ;;  %v323_v25 = vadd.f32 %v1755_v11, %v301_v14  ;;  %s962_s28 = sadd.s32 %s1111_s29, %s1110_s27  ;;  %s965_s13 = sshll.u32 %s272_s25, 4  ;;  %s1933_s13 = int_to_ptr.vmem [resolvable:$true] %s965_s13 }
  0xaa   : > { %v324_v27 = vadd.f32 %v1755_v11, %v302_v17  ;;  %v310_v28 = vmul.f32 %v1753_v10, %v286_v20  ;;  %v329_v29 = vadd.f32 %v1755_v11, %v307_v21  ;;  %v330_v30 = vadd.f32 %v1755_v11, %v308_v22  ;;  %s1112_s14 = sshll.u32 %s962_s28, 7  ;;  %s950_s18 = scalar_lea.sflag [#allocation4], %s1731_s1 }
  0xab   : > { %v337_v31 = vmax.f32 %v321_v23, 0.0  ;;  %v338_v32 = vmax.f32 %v322_v24, 0.0  ;;  %v339_v33 = vmax.f32 %v323_v25, 0.0  ;;  %v331_v34 = vadd.f32 %v1755_v11, %v309_v26  ;;  %s1938_s30 = scalar_lea.hbm %s1998_s4, %s1112_s14  ;;  %s1359_s19 = scalar_lea.vmem %s1933_s13, 512 }
  0xac   : > { %v340_v35 = vmax.f32 %v324_v27, 0.0  ;;  %v332_v36 = vadd.f32 %v1755_v11, %v310_v28  ;;  %v345_v37 = vmax.f32 %v329_v29, 0.0  ;;  %v346_v38 = vmax.f32 %v330_v30, 0.0  ;;  %p1360_p1 = scmp.ne.s32.totalorder %s1933_s13, %s1359_s19  ;;  %s1474_s9 = smov [#allocation10]  }
  0xad   : > { %v354_v40 = vsel %vm353_vm1, %v337_v31, 0.0  ;;  %v355_v41 = vsel %vm353_vm1, %v339_v33, 0.0  ;;  %v357_v42 = vsel %vm353_vm1, %v338_v32, 0.0  ;;  %v347_v43 = vmax.f32 %v331_v34, 0.0  ;;  %s1363_s11 = sshll.u32 %s1474_s9, 4  ;;  %s1364_s11 = int_to_ptr.vmem [resolvable:$false] %s1363_s11 }
  0xae   : > { %v356_v44 = vadd.f32 %v355_v41, %v354_v40  ;;  %v358_v45 = vsel %vm353_vm1, %v340_v35, 0.0  ;;  %v348_v46 = vmax.f32 %v332_v36, 0.0  ;;  %v366_v47 = vsel %vm353_vm1, %v345_v37, 0.0  ;;  %p1361_p2 = pnand %p1360_p1, %p1666_p4  ;;  %s1365_s5 = scalar_lea.vmem %s1364_s11, 1024 }
  0xaf   : > { %v359_v49 = vadd.f32 %v358_v45, %v357_v42  ;;  %v367_v50 = vsel %vm353_vm1, %v347_v43, 0.0  ;;  %v369_v51 = vsel %vm353_vm1, %v346_v38, 0.0  ;;  %v1789_v52 = vmul.f32 %v1753_v10, %v279_v39  ;;  %p1366_p6 = scmp.lt.s32.totalorder %s1933_s13, %s1364_s11  ;;  %p1367_p8 = scmp.lt.s32.totalorder %s1365_s5, %s1359_s19 }
  0xb0   : > { %v386_v53 = vcombine.high %v356_v44, %v356_v44  ;;  %v393_v54 = vrot.slane %v356_v44, %v1763_v18  ;;  %v1792_v55 = vadd.f32 %v367_v50, %v366_v47  ;;  %v370_v56 = vsel %vm353_vm1, %v348_v46, 0.0  ;;  %p1362_p10 = pneg %p1361_p2 }
  0xb1   : > { %v403_v57 = vcombine.high %v359_v49, %v359_v49  ;;  %v410_v58 = vrot.slane %v359_v49, %v1763_v18  ;;  %v1796_v59 = vadd.f32 %v370_v56, %v369_v51  ;;  %v1799_v60 = vmul.f32 %v1753_v10, %v280_v48  ;;  %p1368_p3 = por %p1367_p8, %p1366_p6 }
  0xb2   : > { %v400_v61 = vrot.slane %v386_v53, %v1763_v18  ;;  %v401_v62 = vcombine.high %v393_v54, %v393_v54  ;;  %v555_v63 = vsel %vm554_vm2, %v393_v54, 0.0  ;;  %v454_v0 = vcombine.high %v1792_v55, %v1792_v55 }
  0xb3   : > { %v417_v1 = vrot.slane %v403_v57, %v1763_v18  ;;  %v418_v2 = vcombine.high %v410_v58, %v410_v58  ;;  %v556_v3 = vrot.slane %v555_v63, 4  ;;  %v583_v4 = vsel %vm554_vm2, %v410_v58, 0.0  ;;  %p1369_p7 = pnand %p1368_p3, %p1362_p10 }
  0xb4   : > { %v402_v5 = vcombine.high %v400_v61, %v400_v61  ;;  %v562_v6 = vsel %vm554_vm2, %v401_v62, 0.0  ;;  %v569_v7 = vsel %vm554_vm2, %v400_v61, 0.0  ;;  %v584_v8 = vrot.slane %v583_v4, 4 }
  0xb5   : > { %v419_v9 = vcombine.high %v417_v1, %v417_v1  ;;  %v557_v12 = vadd.f32 %v556_v3, %v555_v63  ;;  %v563_v13 = vrot.slane %v562_v6, 4  ;;  %v570_v14 = vrot.slane %v569_v7, 4 }
  0xb6   : > { %v576_v15 = vsel %vm554_vm2, %v402_v5, 0.0  ;;  %v585_v16 = vadd.f32 %v584_v8, %v583_v4  ;;  %v590_v17 = vsel %vm554_vm2, %v418_v2, 0.0  ;;  %v597_v19 = vsel %vm554_vm2, %v417_v1, 0.0 }
  0xb7   : > { %vm812_vm3 = vcmask 1041409   ;;  %v558_v20 = vrot.slane %v557_v12, 2  ;;  %v564_v21 = vadd.f32 %v563_v13, %v562_v6  ;;  %v571_v22 = vadd.f32 %v570_v14, %v569_v7 }
  0xb8   : > { %v577_v23 = vrot.slane %v576_v15, 4  ;;  %vm814_vm4 = vcmask 1042434   ;;  %v586_v24 = vrot.slane %v585_v16, 2  ;;  %v591_v25 = vrot.slane %v590_v17, 4 }
  0xb9   : > { %v598_v26 = vrot.slane %v597_v19, 4  ;;  %v604_v27 = vsel %vm554_vm2, %v419_v9, 0.0  ;;  %vm816_vm5 = vcmask 1043459   ;;  %v559_v28 = vadd.f32 %v558_v20, %v557_v12 }
  0xba   : > { %v565_v29 = vrot.slane %v564_v21, 2  ;;  %v572_v30 = vrot.slane %v571_v22, 2  ;;  %v578_v31 = vadd.f32 %v577_v23, %v576_v15  ;;  %vm818_vm6 = vcmask 1044484  }
  0xbb   : > { %v587_v32 = vadd.f32 %v586_v24, %v585_v16  ;;  %v592_v33 = vadd.f32 %v591_v25, %v590_v17  ;;  %v599_v34 = vadd.f32 %v598_v26, %v597_v19  ;;  %v605_v35 = vrot.slane %v604_v27, 4 }
  0xbc   : > { %vm820_vm7 = vcmask 1045509   ;;  %v560_v36 = vrot.slane %v559_v28, 1  ;;  %v566_v37 = vadd.f32 %v565_v29, %v564_v21  ;;  %v573_v38 = vadd.f32 %v572_v30, %v571_v22 }
  0xbd   : > { %v579_v39 = vrot.slane %v578_v31, 2  ;;  %vm822_vm8 = vcmask 1046534   ;;  %v588_v40 = vrot.slane %v587_v32, 1  ;;  %v593_v41 = vrot.slane %v592_v33, 2 }
  0xbe   : > { %v600_v42 = vrot.slane %v599_v34, 2  ;;  %v606_v43 = vadd.f32 %v605_v35, %v604_v27  ;;  %vm824_vm9 = vcmask 1047559   ;;  %v561_v44 = vadd.f32 %v560_v36, %v559_v28 }
  0xbf   : > { %v567_v45 = vrot.slane %v566_v37, 1  ;;  %v574_v46 = vrot.slane %v573_v38, 1  ;;  %v580_v47 = vadd.f32 %v579_v39, %v578_v31  ;;  %v589_v48 = vadd.f32 %v588_v40, %v587_v32 }
  0xc0   : > { %v594_v49 = vadd.f32 %v593_v41, %v592_v33  ;;  %v601_v50 = vadd.f32 %v600_v42, %v599_v34  ;;  %v607_v51 = vrot.slane %v606_v43, 2  ;;  %v461_v57 = vrot.slane %v1792_v55, %v1763_v18 }
  0xc1   : > { %v568_v53 = vadd.f32 %v567_v45, %v566_v37  ;;  %v575_v54 = vadd.f32 %v574_v46, %v573_v38  ;;  %v581_v56 = vrot.slane %v580_v47, 1  ;;  %v468_v63 = vrot.slane %v454_v0, %v1763_v18 }
  0xc2   : > { %v595_v58 = vrot.slane %v594_v49, 1  ;;  %v602_v61 = vrot.slane %v601_v50, 1  ;;  %v608_v62 = vadd.f32 %v607_v51, %v606_v43  ;;  %v469_v3 = vcombine.high %v461_v57, %v461_v57 }
  0xc3   : > { %v582_v1 = vadd.f32 %v581_v56, %v580_v47  ;;  %v813_v2 = vsel %vm812_vm3, %v568_v53, %v561_v44  ;;  %v471_v4 = vcombine.high %v1796_v59, %v1796_v59  ;;  %v470_v12 = vcombine.high %v468_v63, %v468_v63 }
  0xc4   : > { %v596_v5 = vadd.f32 %v595_v58, %v594_v49  ;;  %v603_v6 = vadd.f32 %v602_v61, %v601_v50  ;;  %v609_v7 = vrot.slane %v608_v62, 1  ;;  %v815_v8 = vsel %vm814_vm4, %v575_v54, %v813_v2  ;;  %v281_v61 = vld [vmem:[%s1735_s8 + $0x30] sm:$0xff] }
  0xc5   : > { %v817_v9 = vsel %vm816_vm5, %v582_v1, %v815_v8  ;;  %v478_v13 = vrot.slane %v1796_v59, %v1763_v18  ;;  %v485_v55 = vrot.slane %v471_v4, %v1763_v18  ;;  %v667_v15 = vsel %vm554_vm2, %v461_v57, 0.0 }
  0xc6   : > { %v610_v0 = vadd.f32 %v609_v7, %v608_v62  ;;  %v819_v14 = vsel %vm818_vm6, %v589_v48, %v817_v9  ;;  %v674_v16 = vsel %vm554_vm2, %v469_v3, 0.0  ;;  %v668_v21 = vrot.slane %v667_v15, 4  ;;  %v282_v7 = vld [vmem:[%s1735_s8 + $0x38] sm:$0xff] }
  0xc7   : > { %v821_v17 = vsel %vm820_vm7, %v596_v5, %v819_v14  ;;  %v486_v19 = vcombine.high %v478_v13, %v478_v13  ;;  %v487_v20 = vcombine.high %v485_v55, %v485_v55  ;;  %v675_v23 = vrot.slane %v674_v16, 4 }
  0xc8   : > { %v823_v22 = vsel %vm822_vm8, %v603_v6, %v821_v17  ;;  %v681_v24 = vsel %vm554_vm2, %v468_v63, 0.0  ;;  %v688_v59 = vsel %vm554_vm2, %v470_v12, 0.0  ;;  %v669_v26 = vadd.f32 %v668_v21, %v667_v15  ;;  %v287_v21 = vld [vmem:[%s1735_s8 + $0x60] sm:$0xff] }
  0xc9   : > { %v825_v25 = vsel %vm824_vm9, %v610_v0, %v823_v22  ;;  %v682_v27 = vrot.slane %v681_v24, 4  ;;  %v689_v28 = vrot.slane %v688_v59, 4  ;;  %v676_v29 = vadd.f32 %v675_v23, %v674_v16 }
  0xca   : > { %1123 = vmatprep.mubr.msk.f32.mxu0 %vm353_vm1, %v825_v25  ;;  %v695_v30 = vsel %vm554_vm2, %v478_v13, 0.0  ;;  %v702_v31 = vsel %vm554_vm2, %v486_v19, 0.0  ;;  %v709_v32 = vsel %vm554_vm2, %v485_v55, 0.0  ;;  %v670_v33 = vrot.slane %v669_v26, 2 }
  0xcb   : > { %v683_v34 = vadd.f32 %v682_v27, %v681_v24  ;;  %v690_v35 = vadd.f32 %v689_v28, %v688_v59  ;;  %v696_v36 = vrot.slane %v695_v30, 4  ;;  %v677_v37 = vrot.slane %v676_v29, 2 }
  0xcc   : > { %v703_v38 = vrot.slane %v702_v31, 4  ;;  %v710_v39 = vrot.slane %v709_v32, 4  ;;  %v716_v40 = vsel %vm554_vm2, %v487_v20, 0.0  ;;  %v671_v41 = vadd.f32 %v670_v33, %v669_v26  ;;  %v290_v33 = vld [vmem:[%s1735_s8 + $0x78] sm:$0xff] }
  0xcd   : > { %v684_v42 = vrot.slane %v683_v34, 2  ;;  %v691_v43 = vrot.slane %v690_v35, 2  ;;  %v697_v44 = vadd.f32 %v696_v36, %v695_v30  ;;  %v678_v45 = vadd.f32 %v677_v37, %v676_v29  ;;  %v288_v29 = vld [vmem:[%s1735_s8 + $0x68] sm:$0xff]  ;;  %v289_v30 = vld [vmem:[%s1735_s8 + $0x70] sm:$0xff] }
  0xce   : > { %v704_v46 = vadd.f32 %v703_v38, %v702_v31  ;;  %v711_v47 = vadd.f32 %v710_v39, %v709_v32  ;;  %v717_v48 = vrot.slane %v716_v40, 4  ;;  %v672_v49 = vrot.slane %v671_v41, 1 }
  0xcf   : > { %v685_v50 = vadd.f32 %v684_v42, %v683_v34  ;;  %v692_v51 = vadd.f32 %v691_v43, %v690_v35  ;;  %v698_v53 = vrot.slane %v697_v44, 2  ;;  %v679_v54 = vrot.slane %v678_v45, 1 }
  0xd0   : > { %v705_v56 = vrot.slane %v704_v46, 2  ;;  %v712_v57 = vrot.slane %v711_v47, 2  ;;  %v718_v58 = vadd.f32 %v717_v48, %v716_v40  ;;  %v673_v62 = vadd.f32 %v672_v49, %v671_v41 }
  0xd1   : > { %v686_v63 = vrot.slane %v685_v50, 1  ;;  %v693_v1 = vrot.slane %v692_v51, 1  ;;  %v699_v2 = vadd.f32 %v698_v53, %v697_v44  ;;  %v680_v3 = vadd.f32 %v679_v54, %v678_v45 }
  0xd2   : > { %v706_v4 = vadd.f32 %v705_v56, %v704_v46  ;;  %v713_v5 = vadd.f32 %v712_v57, %v711_v47  ;;  %v719_v6 = vrot.slane %v718_v58, 2  ;;  %v305_v13 = vmul.f32 %v1753_v10, %v281_v61 }
  0xd3   : > { %v687_v8 = vadd.f32 %v686_v63, %v685_v50  ;;  %v694_v9 = vadd.f32 %v693_v1, %v692_v51  ;;  %v700_v12 = vrot.slane %v699_v2, 1  ;;  %v833_v15 = vsel %vm812_vm3, %v680_v3, %v673_v62 }
  0xd4   : > { %v707_v55 = vrot.slane %v706_v4, 1  ;;  %v714_v0 = vrot.slane %v713_v5, 1  ;;  %v720_v14 = vadd.f32 %v719_v6, %v718_v58  ;;  %v306_v19 = vmul.f32 %v1753_v10, %v282_v7 }
  0xd5   : > { %v701_v16 = vadd.f32 %v700_v12, %v699_v2  ;;  %v834_v17 = vsel %vm814_vm4, %v687_v8, %v833_v15  ;;  %v325_v20 = vadd.f32 %v1755_v11, %v1789_v52  ;;  %v326_v26 = vadd.f32 %v1755_v11, %v1799_v60 }
  0xd6   : > { %v708_v22 = vadd.f32 %v707_v55, %v706_v4  ;;  %v715_v23 = vadd.f32 %v714_v0, %v713_v5  ;;  %v721_v24 = vrot.slane %v720_v14, 1  ;;  %v835_v59 = vsel %vm816_vm5, %v694_v9, %v834_v17 }
  0xd7   : > { %v836_v25 = vsel %vm818_vm6, %v701_v16, %v835_v59  ;;  %v327_v27 = vadd.f32 %v1755_v11, %v305_v13  ;;  %v328_v28 = vadd.f32 %v1755_v11, %v306_v19  ;;  %v341_v32 = vmax.f32 %v325_v20, 0.0 }
  0xd8   : > { %v722_v31 = vadd.f32 %v721_v24, %v720_v14  ;;  %v837_v52 = vsel %vm820_vm7, %v708_v22, %v836_v25  ;;  %v311_v34 = vmul.f32 %v1753_v10, %v287_v21  ;;  %v342_v36 = vmax.f32 %v326_v26, 0.0 }
  0xd9   : > { %v838_v35 = vsel %vm822_vm8, %v715_v23, %v837_v52  ;;  %v343_v37 = vmax.f32 %v327_v27, 0.0  ;;  %v344_v38 = vmax.f32 %v328_v28, 0.0  ;;  %v360_v39 = vsel %vm353_vm1, %v341_v32, 0.0 }
  0xda   : > { %v839_v60 = vsel %vm824_vm9, %v722_v31, %v838_v35  ;;  %v312_v40 = vmul.f32 %v1753_v10, %v288_v29  ;;  %v313_v41 = vmul.f32 %v1753_v10, %v289_v30  ;;  %v363_v43 = vsel %vm353_vm1, %v342_v36, 0.0 }
  0xdb   : > { %1126 = vmatprep.mubr.msk.f32.mxu1 %vm353_vm1, %v839_v60  ;;  %v361_v42 = vsel %vm353_vm1, %v343_v37, 0.0  ;;  %v364_v44 = vsel %vm353_vm1, %v344_v38, 0.0  ;;  %v314_v45 = vmul.f32 %v1753_v10, %v290_v33  ;;  %v333_v48 = vadd.f32 %v1755_v11, %v311_v34 }
  0xdc   : > { %v362_v46 = vadd.f32 %v361_v42, %v360_v39  ;;  %v365_v47 = vadd.f32 %v364_v44, %v363_v43  ;;  %v1872_v49 = vadd.f32 %v1755_v11, %v312_v40  ;;  %v335_v50 = vadd.f32 %v1755_v11, %v313_v41 }
  0xdd   : > { %v1876_v51 = vadd.f32 %v1755_v11, %v314_v45  ;;  %v349_v58 = vmax.f32 %v333_v48, 0.0  ;;  %vm944_vm10 = vcmask 15360  }
  0xde   : > { %v420_v53 = vcombine.high %v362_v46, %v362_v46  ;;  %v427_v54 = vrot.slane %v362_v46, %v1763_v18  ;;  %v437_v56 = vcombine.high %v365_v47, %v365_v47  ;;  %v444_v57 = vrot.slane %v365_v47, %v1763_v18 }
  0xdf   : > { %v350_v10 = vmax.f32 %v1872_v49, 0.0  ;;  %v351_v61 = vmax.f32 %v335_v50, 0.0  ;;  %v352_v62 = vmax.f32 %v1876_v51, 0.0  ;;  %v372_v5 = vsel %vm353_vm1, %v349_v58, 0.0 }
  0xe0   : > { %v434_v63 = vrot.slane %v420_v53, %v1763_v18  ;;  %v435_v1 = vcombine.high %v427_v54, %v427_v54  ;;  %v451_v2 = vrot.slane %v437_v56, %v1763_v18  ;;  %v452_v3 = vcombine.high %v444_v57, %v444_v57 }
  0xe1   : > { %v611_v11 = vsel %vm554_vm2, %v427_v54, 0.0  ;;  %v639_v4 = vsel %vm554_vm2, %v444_v57, 0.0  ;;  %v373_v6 = vsel %vm353_vm1, %v351_v61, 0.0 }
  0xe2   : > { %v436_v7 = vcombine.high %v434_v63, %v434_v63  ;;  %v453_v8 = vcombine.high %v451_v2, %v451_v2  ;;  %v612_v9 = vrot.slane %v611_v11, 4  ;;  %v618_v12 = vsel %vm554_vm2, %v435_v1, 0.0 }
  0xe3   : > { %v619_v13 = vrot.slane %v618_v12, 4  ;;  %v625_v55 = vsel %vm554_vm2, %v434_v63, 0.0  ;;  %v640_v0 = vrot.slane %v639_v4, 4  ;;  %v646_v14 = vsel %vm554_vm2, %v452_v3, 0.0 }
  0xe4   : > { %v613_v15 = vadd.f32 %v612_v9, %v611_v11  ;;  %v626_v16 = vrot.slane %v625_v55, 4  ;;  %v632_v17 = vsel %vm554_vm2, %v436_v7, 0.0  ;;  %v647_v19 = vrot.slane %v646_v14, 4 }
  0xe5   : > { %v620_v20 = vadd.f32 %v619_v13, %v618_v12  ;;  %v633_v21 = vrot.slane %v632_v17, 4  ;;  %v641_v22 = vadd.f32 %v640_v0, %v639_v4  ;;  %v653_v23 = vsel %vm554_vm2, %v451_v2, 0.0 }
  0xe6   : > { %v614_v24 = vrot.slane %v613_v15, 2  ;;  %v627_v59 = vadd.f32 %v626_v16, %v625_v55  ;;  %v648_v25 = vadd.f32 %v647_v19, %v646_v14  ;;  %v654_v26 = vrot.slane %v653_v23, 4 }
  0xe7   : > { %v621_v27 = vrot.slane %v620_v20, 2  ;;  %v634_v28 = vadd.f32 %v633_v21, %v632_v17  ;;  %v642_v29 = vrot.slane %v641_v22, 2  ;;  %v660_v30 = vsel %vm554_vm2, %v453_v8, 0.0 }
  0xe8   : > { %v615_v31 = vadd.f32 %v614_v24, %v613_v15  ;;  %v628_v52 = vrot.slane %v627_v59, 2  ;;  %v649_v32 = vrot.slane %v648_v25, 2  ;;  %v655_v33 = vadd.f32 %v654_v26, %v653_v23 }
  0xe9   : > { %v622_v34 = vadd.f32 %v621_v27, %v620_v20  ;;  %v635_v35 = vrot.slane %v634_v28, 2  ;;  %v643_v36 = vadd.f32 %v642_v29, %v641_v22  ;;  %v661_v37 = vrot.slane %v660_v30, 4 }
  0xea   : > { %v616_v38 = vrot.slane %v615_v31, 1  ;;  %v629_v60 = vadd.f32 %v628_v52, %v627_v59  ;;  %v650_v39 = vadd.f32 %v649_v32, %v648_v25  ;;  %v656_v40 = vrot.slane %v655_v33, 2 }
  0xeb   : > { %v623_v41 = vrot.slane %v622_v34, 1  ;;  %v636_v42 = vadd.f32 %v635_v35, %v634_v28  ;;  %v644_v43 = vrot.slane %v643_v36, 1  ;;  %v662_v44 = vadd.f32 %v661_v37, %v660_v30 }
  0xec   : > { %v617_v45 = vadd.f32 %v616_v38, %v615_v31  ;;  %v630_v46 = vrot.slane %v629_v60, 1  ;;  %v651_v47 = vrot.slane %v650_v39, 1  ;;  %v657_v48 = vadd.f32 %v656_v40, %v655_v33 }
  0xed   : > { %v624_v50 = vadd.f32 %v623_v41, %v622_v34  ;;  %v637_v53 = vrot.slane %v636_v42, 1  ;;  %v645_v54 = vadd.f32 %v644_v43, %v643_v36  ;;  %v663_v56 = vrot.slane %v662_v44, 2 }
  0xee   : > { %v631_v57 = vadd.f32 %v630_v46, %v629_v60  ;;  %v652_v58 = vadd.f32 %v651_v47, %v650_v39  ;;  %v658_v61 = vrot.slane %v657_v48, 1  ;;  %v374_v63 = vadd.f32 %v373_v6, %v372_v5 }
  0xef   : > { %v638_v1 = vadd.f32 %v637_v53, %v636_v42  ;;  %v664_v2 = vadd.f32 %v663_v56, %v662_v44  ;;  %v826_v3 = vsel %vm812_vm3, %v624_v50, %v617_v45  ;;  %v375_v11 = vsel %vm353_vm1, %v350_v10, 0.0 }
  0xf0   : > { %v659_v4 = vadd.f32 %v658_v61, %v657_v48  ;;  %v827_v7 = vsel %vm814_vm4, %v631_v57, %v826_v3  ;;  %v376_v8 = vsel %vm353_vm1, %v352_v62, 0.0  ;;  %v488_v9 = vcombine.high %v374_v63, %v374_v63 }
  0xf1   : > { %v665_v12 = vrot.slane %v664_v2, 1  ;;  %v828_v13 = vsel %vm816_vm5, %v638_v1, %v827_v7  ;;  %v377_v5 = vadd.f32 %v376_v8, %v375_v11  ;;  %v495_v6 = vrot.slane %v374_v63, %v1763_v18 }
  0xf2   : > { %v829_v55 = vsel %vm818_vm6, %v645_v54, %v828_v13  ;;  %v502_v49 = vrot.slane %v488_v9, %v1763_v18 }
  0xf3   : > { %v666_v0 = vadd.f32 %v665_v12, %v664_v2  ;;  %v830_v10 = vsel %vm820_vm7, %v652_v58, %v829_v55  ;;  %v503_v14 = vcombine.high %v495_v6, %v495_v6  ;;  %v505_v15 = vcombine.high %v377_v5, %v377_v5 }
  0xf4   : > { %v831_v51 = vsel %vm822_vm8, %v659_v4, %v830_v10  ;;  %v504_v16 = vcombine.high %v502_v49, %v502_v49  ;;  %v512_v62 = vrot.slane %v377_v5, %v1763_v18  ;;  %v723_v17 = vsel %vm554_vm2, %v495_v6, 0.0 }
  0xf5   : > { %v832_v19 = vsel %vm824_vm9, %v666_v0, %v831_v51  ;;  %v519_v20 = vrot.slane %v505_v15, %v1763_v18  ;;  %v724_v21 = vrot.slane %v723_v17, 4  ;;  %v730_v22 = vsel %vm554_vm2, %v503_v14, 0.0 }
  0xf6   : > { %1124 = vmatmul.mubr.msk.f32.vlgmr.msra.gmra.mrb[0].mxu0 %vm353_vm1, %v832_v19  ;;  %v520_v23 = vcombine.high %v512_v62, %v512_v62  ;;  %v731_v24 = vrot.slane %v730_v22, 4  ;;  %v737_v59 = vsel %vm554_vm2, %v502_v49, 0.0  ;;  %v744_v25 = vsel %vm554_vm2, %v504_v16, 0.0 }
  0xf7   : > { %v521_v26 = vcombine.high %v519_v20, %v519_v20  ;;  %v725_v27 = vadd.f32 %v724_v21, %v723_v17  ;;  %v738_v28 = vrot.slane %v737_v59, 4  ;;  %v745_v29 = vrot.slane %v744_v25, 4 }
  0xf8   : > { %v732_v30 = vadd.f32 %v731_v24, %v730_v22  ;;  %v751_v31 = vsel %vm554_vm2, %v512_v62, 0.0  ;;  %v758_v18 = vsel %vm554_vm2, %v520_v23, 0.0  ;;  %v765_v52 = vsel %vm554_vm2, %v519_v20, 0.0 }
  0xf9   : > { %v726_v32 = vrot.slane %v725_v27, 2  ;;  %v739_v33 = vadd.f32 %v738_v28, %v737_v59  ;;  %v746_v34 = vadd.f32 %v745_v29, %v744_v25  ;;  %v752_v35 = vrot.slane %v751_v31, 4 }
  0xfa   : > { %v733_v36 = vrot.slane %v732_v30, 2  ;;  %v759_v37 = vrot.slane %v758_v18, 4  ;;  %v766_v38 = vrot.slane %v765_v52, 4  ;;  %v772_v60 = vsel %vm554_vm2, %v521_v26, 0.0 }
  0xfb   : > { %v727_v39 = vadd.f32 %v726_v32, %v725_v27  ;;  %v740_v40 = vrot.slane %v739_v33, 2  ;;  %v747_v41 = vrot.slane %v746_v34, 2  ;;  %v753_v42 = vadd.f32 %v752_v35, %v751_v31 }
  0xfc   : > { %v734_v43 = vadd.f32 %v733_v36, %v732_v30  ;;  %v760_v44 = vadd.f32 %v759_v37, %v758_v18  ;;  %v767_v45 = vadd.f32 %v766_v38, %v765_v52  ;;  %v773_v46 = vrot.slane %v772_v60, 4 }
  0xfd   : > { %v728_v47 = vrot.slane %v727_v39, 1  ;;  %v741_v48 = vadd.f32 %v740_v40, %v739_v33  ;;  %v748_v50 = vadd.f32 %v747_v41, %v746_v34  ;;  %v754_v53 = vrot.slane %v753_v42, 2 }
  0xfe   : > { %v735_v54 = vrot.slane %v734_v43, 1  ;;  %v761_v56 = vrot.slane %v760_v44, 2  ;;  %v768_v57 = vrot.slane %v767_v45, 2  ;;  %v774_v58 = vadd.f32 %v773_v46, %v772_v60 }
  0xff   : > { %v729_v61 = vadd.f32 %v728_v47, %v727_v39  ;;  %v742_v63 = vrot.slane %v741_v48, 1  ;;  %v749_v1 = vrot.slane %v748_v50, 1  ;;  %v755_v2 = vadd.f32 %v754_v53, %v753_v42 }
 0x100   : > { %v736_v3 = vadd.f32 %v735_v54, %v734_v43  ;;  %v762_v11 = vadd.f32 %v761_v56, %v760_v44  ;;  %v769_v4 = vadd.f32 %v768_v57, %v767_v45  ;;  %v775_v7 = vrot.slane %v774_v58, 2 }
 0x101   : > { %v743_v8 = vadd.f32 %v742_v63, %v741_v48  ;;  %v750_v9 = vadd.f32 %v749_v1, %v748_v50  ;;  %v756_v12 = vrot.slane %v755_v2, 1 }
 0x102   : > { %v763_v13 = vrot.slane %v762_v11, 1  ;;  %v770_v5 = vrot.slane %v769_v4, 1  ;;  %v776_v6 = vadd.f32 %v775_v7, %v774_v58  ;;  %v840_v55 = vsel %vm812_vm3, %v736_v3, %v729_v61 }
 0x103   : > { %v757_v49 = vadd.f32 %v756_v12, %v755_v2  ;;  %v841_v0 = vsel %vm814_vm4, %v743_v8, %v840_v55 }
 0x104   : > { %v764_v10 = vadd.f32 %v763_v13, %v762_v11  ;;  %v771_v14 = vadd.f32 %v770_v5, %v769_v4  ;;  %v777_v15 = vrot.slane %v776_v6, 1  ;;  %v842_v51 = vsel %vm816_vm5, %v750_v9, %v841_v0 }
 0x105   : > { %v843_v16 = vsel %vm818_vm6, %v757_v49, %v842_v51 }
 0x106   : > { %v778_v62 = vadd.f32 %v777_v15, %v776_v6  ;;  %v844_v17 = vsel %vm820_vm7, %v764_v10, %v843_v16 }
 0x107   : > { %v845_v19 = vsel %vm822_vm8, %v771_v14, %v844_v17 }
 0x108   : > { %v846_v20 = vsel %vm824_vm9, %v778_v62, %v845_v19 }
 0x109   : > { %1127 = vmatmul.mubr.msk.f32.vlgmr.msra.gmra.mrb[0].mxu1 %vm353_vm1, %v846_v20 }
 0x1c9   : > { %v1125_v21 = vpop.f32.mrb[0].mxu0 }
 0x1ca   : > { %946 = vst.msk [vmem:[%s272_s25 + $0x8] sm:$0xff] %vm944_vm10, %v1125_v21  ;;  %v925_v22 = vpop.f32.mrb[1].mxu0 }
 0x1cb   : > { %945 = vst.msk [vmem:[%s272_s25] sm:$0xff] %vm944_vm10, %v925_v22 }
 0x1dc   : > { %v1128_v23 = vpop.f32.mrb[0].mxu1 }
 0x1dd   : > { %948 = vst.msk [vmem:[%s272_s25 + $0x18] sm:$0xff] %vm944_vm10, %v1128_v23  ;;  %v935_v24 = vpop.f32.mrb[1].mxu1 }
 0x1de   : > { %947 = vst.msk [vmem:[%s272_s25 + $0x10] sm:$0xff] %vm944_vm10, %v935_v24 }
 0x1df   : > { %1372 = shalt.err (!%p1369_p7)
}
 0x1e0   : > { %s1373_s26 = scalar_lea.hbm %s1938_s30, 512  ;;  %s1377_s24 = scalar_lea.hbm %s1998_s4, 2048 }
 0x1e1   : > { %p1374_p12 = scmp.ne.s32.totalorder %s1938_s30, %s1373_s26  ;;  %p1378_p5 = scmp.lt.u32.totalorder %s1938_s30, %s1998_s4 }
 0x1e2   : > { %p1379_p9 = scmp.lt.u32.totalorder %s1377_s24, %s1373_s26  ;;  %p1381_p1 = scmp.lt.u32.totalorder %s1373_s26, %s1938_s30 }
 0x1e3   : > { %p1375_p11 = pnand %p1374_p12, %p1666_p4 }
 0x1e4   : > { %p1380_p0 = por %p1379_p9, %p1378_p5 }
 0x1e5   : > { %p1376_p13 = pneg %p1375_p11 }
 0x1e6   : > { %p1382_p2 = por %p1381_p1, %p1380_p0 }
 0x1e8   : > { %p1383_p10 = pnand %p1382_p2, %p1376_p13 }
 0x1ea   : > { %1386 = shalt.err (!%p1383_p10)
}
 0x1eb   : > { %s1475_s25 = smov 128   ;;  %s1476_s27 = smov 8  }
 0x1ec   : > { %1145 = dma.vmem_to_hbm [thread:$0]  (%p1666_p4), %s1933_s13, 512, %s1938_s30, %s950_s18, %s1475_s25, %s1475_s25, %s1476_s27  }
 0x1ed PF: > { %s2029_s29 = sld [smem:[#allocation15_spill]]  ;;  %p1172_p6 = scmp.ge.s32.totalorder %s1465_s22, 2 }
 0x1ee   : > { %s980_s28 = sand.u32 1, %s1437_s15  }
 0x1ef   : > { %s981_s14 = scalar_lea.sflag [#allocation4], %s980_s28 }
 0x1f3   : > { %p2030_p8 = scmp.ne.s32.totalorder %s2029_s29, 0 }
 0x1f5   : > { %p1162_p3 = pnand %p1172_p6, %p2030_p8 }
 0x1f7   : > { %1432 = dma.done.wait (!%p1162_p3), %s981_s14, 512  }
 0x1f8   : > { %1434 = vsyncadd (!%p1162_p3), %s981_s14, 4294966784  ;;  %s22_s22 = sadd.s32 1, %s1465_s22   ;;  %s2031_s23 = sld [smem:[#allocation16_spill]] }
 0x1f9   : > { %p19_p7 = scmp.ge.s32.totalorder %s22_s22, 6   ;;  %s2032_s1 = sld [smem:[#allocation17_spill]] }
 0x1fa   : > { %s2033_s15 = smov %s1441_s16  ;;  %s2034_s16 = smov %s1445_s17 }
 0x1fb   : > { %s2035_s17 = smov %s1683_s12  ;;  %s2036_s18 = smov %s1457_s20 }
 0x1fc   : > { %s2037_s19 = smov %s1461_s21  ;;  %21 = sbr.rel (!%p19_p7) target bundleno = 13 (0xd), region = 93 }
 0x1fe   : > { %s2038_s20 = smov %s2031_s23 }
 0x1ff   : > { %s2039_s21 = smov %s2032_s1 }
 0x203   :  { %986 = vsyncpa [#allocation3], 1 }
 0x204   :  { %988 = vsyncpa [#allocation3 + $0x1], 1 }
 0x205   :  { %989 = vsyncpa [#allocation6], 1 }
 0x206   :  { %990 = vsyncpa [#allocation9], 1 }
 0x207   :  { %991 = vsyncpa [#allocation4], 1 }
 0x208   :  { %993 = vsyncpa [#allocation4 + $0x1], 1 }

</bundles_post_ra>
